<compile_context>
chip_gen: v7x
topology: tpu7x:2x2x1
jax: 0.10.0
libtpu: 0.0.40
codegen_flags: <defaults>
</compile_context>

<pallas_src>
import jax
import jax.numpy as jnp
from jax.experimental import pallas as pl
from jax.experimental.pallas import tpu as pltpu


def _constrain(w):
    """torch constrain(): row-wise L2 norm over dim=1, norms < 1 clamped to 1, divide."""
    n = jnp.sqrt(jnp.sum(w * w, axis=1, keepdims=True))
    return w / jnp.maximum(n, 1.0)


def _round_up(x, m):
    return ((x + m - 1) // m) * m


def ncf_kernel(uid_ref, iid_ref, tu_ref, ti_ref, w1u_ref, w1i_ref, b1_ref,
               rs_ref, ru_ref, ri_ref, out_ref):
    """One batch tile, feature-major (D, TB) layout (batch on the 128-lane axis)."""
    nu = tu_ref.shape[1]
    ni = ti_ref.shape[1]
    tb = uid_ref.shape[1]
    f32 = jnp.float32

    # Fused embedding gather: one-hot(ids) @ table^T on the MXU.  Padded batch
    # slots carry an out-of-range id -> all-zero one-hot -> zero embedding row.
    oh_u = jnp.where(
        uid_ref[...] == jax.lax.broadcasted_iota(jnp.int32, (nu, tb), 0),
        1.0, 0.0).astype(f32)                                       # (NU, TB)
    oh_i = jnp.where(
        iid_ref[...] == jax.lax.broadcasted_iota(jnp.int32, (ni, tb), 0),
        1.0, 0.0).astype(f32)                                       # (NI, TB)
    u = jnp.dot(tu_ref[...], oh_u, preferred_element_type=f32)      # (D, TB)
    it = jnp.dot(ti_ref[...], oh_i, preferred_element_type=f32)     # (D, TB)

    # GMF branch (VPU, lane-dense: batch is the 128-lane axis).
    gmf = u * it

    # MLP branch, concat-free and transposed:
    #   mlp^T = W[:, :D] @ u^T + W[:, D:] @ i^T + b
    mlp = (jnp.dot(w1u_ref[...], u, preferred_element_type=f32)
           + jnp.dot(w1i_ref[...], it, preferred_element_type=f32)
           + b1_ref[...])                                           # (D,TB) + (D,1)

    t = jnp.tanh(gmf + mlp)                                         # EUP

    # Fused output rows [score; |u|^2; |i|^2; 0] via tiny selector matmuls ->
    # avoids three separate cross-sublane reductions and masked partial stores;
    # single dense (4, TB) store per tile.
    out_ref[...] = (jnp.dot(rs_ref[...], t, preferred_element_type=f32)
                    + jnp.dot(ru_ref[...], u * u, preferred_element_type=f32)
                    + jnp.dot(ri_ref[...], it * it, preferred_element_type=f32))


def ncf_forward(users, items, user_table, item_table, w_mlp, b_mlp, w_fc, reg,
                *, block_cols=2048):
    """Forward pass of the NCF module. Returns (inferences (B, 1), regs scalar)."""
    NU, D = user_table.shape
    NI, _ = item_table.shape
    B = int(users.shape[0])

    # --- Grid-invariant preprocessing (hoisted out of the kernel) -------------
    w1c = _constrain(w_mlp.astype(jnp.float32))   # (D, 2D)  torch (out, in) layout
    w2c = _constrain(w_fc.astype(jnp.float32))    # (1, D)
    w1u = w1c[:, :D]                              # users half of W_mlp
    w1i = w1c[:, D:]                              # items half
    b1 = b_mlp.astype(jnp.float32).reshape(D, 1)

    # Selector rows so the kernel emits [score; |u|^2; |i|^2; 0] in one result.
    r_score = jnp.zeros((4, D), jnp.float32).at[0].set(w2c[0])
    r_u = jnp.zeros((4, D), jnp.float32).at[1].set(1.0)
    r_i = jnp.zeros((4, D), jnp.float32).at[2].set(1.0)

    # Tables, feature-major and VMEM-resident (row count padded to a sublane
    # multiple; padded table rows are zero).
    # TODO(synk): for tables too large to keep resident in VMEM, replace the
    # one-hot gather with a manual double-buffered DMA row gather
    # (memory_space=pl.ANY + pltpu.make_async_copy).
    nu_pad = _round_up(max(NU, 8), 8)
    ni_pad = _round_up(max(NI, 8), 8)
    tab_u_t = jnp.pad(user_table.astype(jnp.float32).T, ((0, 0), (0, nu_pad - NU)))
    tab_i_t = jnp.pad(item_table.astype(jnp.float32).T, ((0, 0), (0, ni_pad - NI)))

    # --- Batch tiling along the lane axis --------------------------------------
    block_cols = max(128, (block_cols // 128) * 128)
    tb = max(128, min(block_cols, _round_up(B, 128)))
    if B > 128 and pl.cdiv(B, tb) < 2:
        # Keep >= 2 tiles so the "parallel" batch axis shards over v7x's 2 TCs.
        tb = max(128, _round_up(pl.cdiv(B, 2), 128))
    n_tiles = pl.cdiv(B, tb)
    b_pad = n_tiles * tb

    # Index rows, lane-dense; padded slots hold an out-of-range id.
    u_row = jnp.pad(users.astype(jnp.int32).reshape(1, B),
                    ((0, 0), (0, b_pad - B)), constant_values=nu_pad)
    i_row = jnp.pad(items.astype(jnp.int32).reshape(1, B),
                    ((0, 0), (0, b_pad - B)), constant_values=ni_pad)

    out = pl.pallas_call(
        ncf_kernel,
        out_shape=jax.ShapeDtypeStruct((4, b_pad), jnp.float32),
        grid_spec=pltpu.PrefetchScalarGridSpec(
            num_scalar_prefetch=0,
            grid=(n_tiles,),
            in_specs=[
                pl.BlockSpec((1, tb), lambda g: (0, g)),        # user ids (tiled)
                pl.BlockSpec((1, tb), lambda g: (0, g)),        # item ids (tiled)
                pl.BlockSpec((D, nu_pad), lambda g: (0, 0)),    # users table^T (resident)
                pl.BlockSpec((D, ni_pad), lambda g: (0, 0)),    # items table^T (resident)
                pl.BlockSpec((D, D), lambda g: (0, 0)),         # W_mlp users half
                pl.BlockSpec((D, D), lambda g: (0, 0)),         # W_mlp items half
                pl.BlockSpec((D, 1), lambda g: (0, 0)),         # bias
                pl.BlockSpec((4, D), lambda g: (0, 0)),         # score selector (FC weight)
                pl.BlockSpec((4, D), lambda g: (0, 0)),         # |u|^2 selector
                pl.BlockSpec((4, D), lambda g: (0, 0)),         # |i|^2 selector
            ],
            out_specs=pl.BlockSpec((4, tb), lambda g: (0, g)),
        ),
        compiler_params=pltpu.CompilerParams(
            # Batch axis is embarrassingly parallel -> shards across the two
            # TensorCores on v7x; harmless no-op on v5e/v6e.
            dimension_semantics=("parallel",)),
    )(u_row, i_row, tab_u_t, tab_i_t, w1u, w1i, b1, r_score, r_u, r_i)

    inferences = out[0, :B].reshape(B, 1)
    # Padded batch slots contribute exact zeros to the sum-of-squares rows.
    regs = reg * (jnp.sqrt(jnp.sum(out[1])) + jnp.sqrt(jnp.sum(out[2])))
    return inferences, regs


if __name__ == "__main__":
    num_users, num_items = 10, 12
    embedding_dim = 32
    reg = 0.01
    batch = 200            # not a multiple of 128 -> exercises padding + 2 tiles

    key = jax.random.PRNGKey(0)
    k_ue, k_ie, k_w1, k_b1, k_w2, k_u, k_i = jax.random.split(key, 7)

    user_table = jax.random.normal(k_ue, (num_users, embedding_dim), jnp.float32)
    item_table = jax.random.normal(k_ie, (num_items, embedding_dim), jnp.float32)
    # torch Linear layouts: _W: weight (D, 2D) + bias (D,); _FC: weight (1, D), no bias.
    w_mlp = jax.random.normal(k_w1, (embedding_dim, 2 * embedding_dim), jnp.float32) * 0.2
    b_mlp = jax.random.normal(k_b1, (embedding_dim,), jnp.float32) * 0.2
    w_fc = jax.random.normal(k_w2, (1, embedding_dim), jnp.float32) * 0.2

    users = jax.random.randint(k_u, (batch,), 0, num_users)
    items = jax.random.randint(k_i, (batch,), 0, num_items)

    inferences, regs = ncf_forward(users, items, user_table, item_table,
                                   w_mlp, b_mlp, w_fc, reg)
    jax.block_until_ready((inferences, regs))

    # Pure-JAX reference (matches the PyTorch forward).
    u_emb = user_table[users]
    i_emb = item_table[items]
    w1c_ref = _constrain(w_mlp)
    w2c_ref = _constrain(w_fc)
    x = jnp.concatenate([u_emb, i_emb], axis=-1)
    mlp_ref = jnp.dot(x, w1c_ref.T, precision=jax.lax.Precision.HIGHEST) + b_mlp[None, :]
    ref_inf = jnp.dot(jnp.tanh(u_emb * i_emb + mlp_ref), w2c_ref.T,
                      precision=jax.lax.Precision.HIGHEST)
    ref_regs = reg * (jnp.linalg.norm(u_emb) + jnp.linalg.norm(i_emb))

    assert inferences.shape == (batch, 1)
    assert jnp.allclose(inferences, ref_inf, atol=5e-3, rtol=5e-3), \
        float(jnp.max(jnp.abs(inferences - ref_inf)))
    assert jnp.allclose(regs, ref_regs, atol=5e-3, rtol=5e-3), \
        (float(regs), float(ref_regs))

    print("KERNEL_OK")
</pallas_src>

<mosaic_0001>
module attributes {stable_mosaic.version = 11 : i64} {
  func.func @ncf_kernel(%arg0: i32, %arg1: memref<1x128xi32, #tpu.memory_space<vmem>>, %arg2: memref<1x128xi32, #tpu.memory_space<vmem>>, %arg3: memref<32x16xf32, #tpu.memory_space<vmem>>, %arg4: memref<32x16xf32, #tpu.memory_space<vmem>>, %arg5: memref<32x32xf32, #tpu.memory_space<vmem>>, %arg6: memref<32x32xf32, #tpu.memory_space<vmem>>, %arg7: memref<32x1xf32, #tpu.memory_space<vmem>>, %arg8: memref<4x32xf32, #tpu.memory_space<vmem>>, %arg9: memref<4x32xf32, #tpu.memory_space<vmem>>, %arg10: memref<4x32xf32, #tpu.memory_space<vmem>>, %arg11: memref<4x128xf32, #tpu.memory_space<vmem>>) attributes {dimension_semantics = [#tpu.dimension_semantics<parallel>], iteration_bounds = array<i64: 2>, scalar_prefetch = 0 : i64, scratch_operands = 0 : i64, tpu.core_type = #tpu.core_type<tc>, window_params = [{transform_indices = @transform_0, window_bounds = array<i64: 1, 128>}, {transform_indices = @transform_1, window_bounds = array<i64: 1, 128>}, {pipeline_mode = #tpu.pipeline_mode<synchronous>, transform_indices = @transform_2, window_bounds = array<i64: 32, 16>}, {pipeline_mode = #tpu.pipeline_mode<synchronous>, transform_indices = @transform_3, window_bounds = array<i64: 32, 16>}, {pipeline_mode = #tpu.pipeline_mode<synchronous>, transform_indices = @transform_4, window_bounds = array<i64: 32, 32>}, {pipeline_mode = #tpu.pipeline_mode<synchronous>, transform_indices = @transform_5, window_bounds = array<i64: 32, 32>}, {pipeline_mode = #tpu.pipeline_mode<synchronous>, transform_indices = @transform_6, window_bounds = array<i64: 32, 1>}, {pipeline_mode = #tpu.pipeline_mode<synchronous>, transform_indices = @transform_7, window_bounds = array<i64: 4, 32>}, {pipeline_mode = #tpu.pipeline_mode<synchronous>, transform_indices = @transform_8, window_bounds = array<i64: 4, 32>}, {pipeline_mode = #tpu.pipeline_mode<synchronous>, transform_indices = @transform_9, window_bounds = array<i64: 4, 32>}, {transform_indices = @transform_10, window_bounds = array<i64: 4, 128>}]} {
    %c0 = arith.constant 0 : index
    %c0_0 = arith.constant 0 : index
    %0 = vector.load %arg1[%c0, %c0_0] : memref<1x128xi32, #tpu.memory_space<vmem>>, vector<1x128xi32>
    %1 = tpu.iota {dimensions = array<i32: 0>} : vector<16x128xi32>
    %2 = vector.broadcast %0 : vector<1x128xi32> to vector<16x128xi32>
    %3 = arith.cmpi eq, %2, %1 : vector<16x128xi32>
    %cst = arith.constant 1.000000e+00 : f32
    %cst_1 = arith.constant 0.000000e+00 : f32
    %4 = vector.broadcast %cst : f32 to vector<16x128xf32>
    %5 = vector.broadcast %cst_1 : f32 to vector<16x128xf32>
    %6 = arith.select %3, %4, %5 : vector<16x128xi1>, vector<16x128xf32>
    %c0_2 = arith.constant 0 : index
    %c0_3 = arith.constant 0 : index
    %7 = vector.load %arg2[%c0_2, %c0_3] : memref<1x128xi32, #tpu.memory_space<vmem>>, vector<1x128xi32>
    %8 = tpu.iota {dimensions = array<i32: 0>} : vector<16x128xi32>
    %9 = vector.broadcast %7 : vector<1x128xi32> to vector<16x128xi32>
    %10 = arith.cmpi eq, %9, %8 : vector<16x128xi32>
    %cst_4 = arith.constant 1.000000e+00 : f32
    %cst_5 = arith.constant 0.000000e+00 : f32
    %11 = vector.broadcast %cst_4 : f32 to vector<16x128xf32>
    %12 = vector.broadcast %cst_5 : f32 to vector<16x128xf32>
    %13 = arith.select %10, %11, %12 : vector<16x128xi1>, vector<16x128xf32>
    %c0_6 = arith.constant 0 : index
    %c0_7 = arith.constant 0 : index
    %14 = vector.load %arg3[%c0_6, %c0_7] : memref<32x16xf32, #tpu.memory_space<vmem>>, vector<32x16xf32>
    %cst_8 = arith.constant dense<0.000000e+00> : vector<32x128xf32>
    %15 = tpu.matmul %14, %6, %cst_8 {dimension_numbers = #tpu.dot_dimension_numbers<[1], [0], [0], [1], [0, 0, 1, 1], [], []>} : vector<32x16xf32>, vector<16x128xf32>, vector<32x128xf32> -> vector<32x128xf32>
    %c0_9 = arith.constant 0 : index
    %c0_10 = arith.constant 0 : index
    %16 = vector.load %arg4[%c0_9, %c0_10] : memref<32x16xf32, #tpu.memory_space<vmem>>, vector<32x16xf32>
    %cst_11 = arith.constant dense<0.000000e+00> : vector<32x128xf32>
    %17 = tpu.matmul %16, %13, %cst_11 {dimension_numbers = #tpu.dot_dimension_numbers<[1], [0], [0], [1], [0, 0, 1, 1], [], []>} : vector<32x16xf32>, vector<16x128xf32>, vector<32x128xf32> -> vector<32x128xf32>
    %18 = arith.mulf %15, %17 : vector<32x128xf32>
    %c0_12 = arith.constant 0 : index
    %c0_13 = arith.constant 0 : index
    %19 = vector.load %arg5[%c0_12, %c0_13] : memref<32x32xf32, #tpu.memory_space<vmem>>, vector<32x32xf32>
    %cst_14 = arith.constant dense<0.000000e+00> : vector<32x128xf32>
    %20 = tpu.matmul %19, %15, %cst_14 {dimension_numbers = #tpu.dot_dimension_numbers<[1], [0], [0], [1], [0, 0, 1, 1], [], []>} : vector<32x32xf32>, vector<32x128xf32>, vector<32x128xf32> -> vector<32x128xf32>
    %c0_15 = arith.constant 0 : index
    %c0_16 = arith.constant 0 : index
    %21 = vector.load %arg6[%c0_15, %c0_16] : memref<32x32xf32, #tpu.memory_space<vmem>>, vector<32x32xf32>
    %cst_17 = arith.constant dense<0.000000e+00> : vector<32x128xf32>
    %22 = tpu.matmul %21, %17, %cst_17 {dimension_numbers = #tpu.dot_dimension_numbers<[1], [0], [0], [1], [0, 0, 1, 1], [], []>} : vector<32x32xf32>, vector<32x128xf32>, vector<32x128xf32> -> vector<32x128xf32>
    %23 = arith.addf %20, %22 : vector<32x128xf32>
    %c0_18 = arith.constant 0 : index
    %c0_19 = arith.constant 0 : index
    %24 = vector.load %arg7[%c0_18, %c0_19] : memref<32x1xf32, #tpu.memory_space<vmem>>, vector<32x1xf32>
    %25 = vector.broadcast %24 : vector<32x1xf32> to vector<32x128xf32>
    %26 = arith.addf %23, %25 : vector<32x128xf32>
    %27 = arith.addf %18, %26 : vector<32x128xf32>
    %28 = math.tanh %27 : vector<32x128xf32>
    %c0_20 = arith.constant 0 : index
    %c0_21 = arith.constant 0 : index
    %29 = vector.load %arg8[%c0_20, %c0_21] : memref<4x32xf32, #tpu.memory_space<vmem>>, vector<4x32xf32>
    %cst_22 = arith.constant dense<0.000000e+00> : vector<4x128xf32>
    %30 = tpu.matmul %29, %28, %cst_22 {dimension_numbers = #tpu.dot_dimension_numbers<[1], [0], [0], [1], [0, 0, 1, 1], [], []>} : vector<4x32xf32>, vector<32x128xf32>, vector<4x128xf32> -> vector<4x128xf32>
    %c0_23 = arith.constant 0 : index
    %c0_24 = arith.constant 0 : index
    %31 = vector.load %arg9[%c0_23, %c0_24] : memref<4x32xf32, #tpu.memory_space<vmem>>, vector<4x32xf32>
    %32 = arith.mulf %15, %15 : vector<32x128xf32>
    %cst_25 = arith.constant dense<0.000000e+00> : vector<4x128xf32>
    %33 = tpu.matmul %31, %32, %cst_25 {dimension_numbers = #tpu.dot_dimension_numbers<[1], [0], [0], [1], [0, 0, 1, 1], [], []>} : vector<4x32xf32>, vector<32x128xf32>, vector<4x128xf32> -> vector<4x128xf32>
    %34 = arith.addf %30, %33 : vector<4x128xf32>
    %c0_26 = arith.constant 0 : index
    %c0_27 = arith.constant 0 : index
    %35 = vector.load %arg10[%c0_26, %c0_27] : memref<4x32xf32, #tpu.memory_space<vmem>>, vector<4x32xf32>
    %36 = arith.mulf %17, %17 : vector<32x128xf32>
    %cst_28 = arith.constant dense<0.000000e+00> : vector<4x128xf32>
    %37 = tpu.matmul %35, %36, %cst_28 {dimension_numbers = #tpu.dot_dimension_numbers<[1], [0], [0], [1], [0, 0, 1, 1], [], []>} : vector<4x32xf32>, vector<32x128xf32>, vector<4x128xf32> -> vector<4x128xf32>
    %38 = arith.addf %34, %37 : vector<4x128xf32>
    %c0_29 = arith.constant 0 : index
    %c0_30 = arith.constant 0 : index
    %39 = vector.load %arg11[%c0_29, %c0_30] : memref<4x128xf32, #tpu.memory_space<vmem>>, vector<4x128xf32>
    tpu.vector_store %arg11[%c0_29, %c0_30], %38 {strides = array<i32>} : memref<4x128xf32, #tpu.memory_space<vmem>>, vector<4x128xf32>,
    return
  }
  func.func @transform_0(%arg0: i32) -> (i32, i32) {
    %c0_i32 = arith.constant 0 : i32
    %c0_i32_0 = arith.constant 0 : i32
    return %c0_i32, %arg0 : i32, i32
  }
  func.func @transform_1(%arg0: i32) -> (i32, i32) {
    %c0_i32 = arith.constant 0 : i32
    %c0_i32_0 = arith.constant 0 : i32
    return %c0_i32, %arg0 : i32, i32
  }
  func.func @transform_2(%arg0: i32) -> (i32, i32) {
    %c0_i32 = arith.constant 0 : i32
    %c0_i32_0 = arith.constant 0 : i32
    %c0_i32_1 = arith.constant 0 : i32
    return %c0_i32, %c0_i32_0 : i32, i32
  }
  func.func @transform_3(%arg0: i32) -> (i32, i32) {
    %c0_i32 = arith.constant 0 : i32
    %c0_i32_0 = arith.constant 0 : i32
    %c0_i32_1 = arith.constant 0 : i32
    return %c0_i32, %c0_i32_0 : i32, i32
  }
  func.func @transform_4(%arg0: i32) -> (i32, i32) {
    %c0_i32 = arith.constant 0 : i32
    %c0_i32_0 = arith.constant 0 : i32
    %c0_i32_1 = arith.constant 0 : i32
    return %c0_i32, %c0_i32_0 : i32, i32
  }
  func.func @transform_5(%arg0: i32) -> (i32, i32) {
    %c0_i32 = arith.constant 0 : i32
    %c0_i32_0 = arith.constant 0 : i32
    %c0_i32_1 = arith.constant 0 : i32
    return %c0_i32, %c0_i32_0 : i32, i32
  }
  func.func @transform_6(%arg0: i32) -> (i32, i32) {
    %c0_i32 = arith.constant 0 : i32
    %c0_i32_0 = arith.constant 0 : i32
    %c0_i32_1 = arith.constant 0 : i32
    return %c0_i32, %c0_i32_0 : i32, i32
  }
  func.func @transform_7(%arg0: i32) -> (i32, i32) {
    %c0_i32 = arith.constant 0 : i32
    %c0_i32_0 = arith.constant 0 : i32
    %c0_i32_1 = arith.constant 0 : i32
    return %c0_i32, %c0_i32_0 : i32, i32
  }
  func.func @transform_8(%arg0: i32) -> (i32, i32) {
    %c0_i32 = arith.constant 0 : i32
    %c0_i32_0 = arith.constant 0 : i32
    %c0_i32_1 = arith.constant 0 : i32
    return %c0_i32, %c0_i32_0 : i32, i32
  }
  func.func @transform_9(%arg0: i32) -> (i32, i32) {
    %c0_i32 = arith.constant 0 : i32
    %c0_i32_0 = arith.constant 0 : i32
    %c0_i32_1 = arith.constant 0 : i32
    return %c0_i32, %c0_i32_0 : i32, i32
  }
  func.func @transform_10(%arg0: i32) -> (i32, i32) {
    %c0_i32 = arith.constant 0 : i32
    %c0_i32_0 = arith.constant 0 : i32
    return %c0_i32, %arg0 : i32, i32
  }
}

</mosaic_0001>

<bundles_post_ra>
// kernel: tpu_custom_call.1
= control target key start
LH: loop header
LB: loop body
LE: loop exit
PB: predicated region body
PF: predicated region fallthrough
CT: control target
= control target key end

     0   :  { %15 = vsyncpa [#allocation3], 0  ;;  %s1752_s0 = inlined_call_operand.vmem [shape: s32[1,256], index: 0, kind: input, shape index: {}]   ;;  %s1753_s1 = inlined_call_operand.vmem [shape: s32[1,256], index: 1, kind: input, shape index: {}]   ;;  %s1754_s2 = inlined_call_operand.vmem [shape: f32[32,16], index: 2, kind: input, shape index: {}]   ;;  %s1755_s3 = inlined_call_operand.vmem [shape: f32[32,16], index: 3, kind: input, shape index: {}]   ;;  %s1756_s4 = inlined_call_operand.vmem [shape: f32[32,32], index: 4, kind: input, shape index: {}]   ;;  %s1757_s5 = inlined_call_operand.vmem [shape: f32[32,32], index: 5, kind: input, shape index: {}]   ;;  %s1758_s6 = inlined_call_operand.vmem [shape: f32[32,1], index: 6, kind: input, shape index: {}]   ;;  %s1759_s7 = inlined_call_operand.vmem [shape: f32[4,32], index: 7, kind: input, shape index: {}]   ;;  %s1760_s8 = inlined_call_operand.vmem [shape: f32[4,32], index: 8, kind: input, shape index: {}]   ;;  %s1761_s9 = inlined_call_operand.vmem [shape: f32[4,32], index: 9, kind: input, shape index: {}]   ;;  %s1762_s10 = inlined_call_operand.hbm [shape: f32[4,256], index: 10, kind: output, shape index: {}]  }
   0x1   :  { %17 = vsyncpa [#allocation3 + $0x1], 0  ;;  %s1531_s13 = smov 0   ;;  %s1533_s14 = smov 0  }
   0x2   :  { %s1535_s15 = smov 0   ;;  %s1537_s16 = smov 0  }
   0x3 LB: > { %s1552_s17 = sadd.s32 4294967295, %s1468_s16   ;;  %s1144_s18 = sadd.s32 4294967294, %s1468_s16   ;;  %s1468_s16 = sphi %s1537_s16, %s1768_s16   ;;  %s1464_s15 = sphi %s1535_s15, %s1767_s15   ;;  %s1460_s14 = sphi %s1533_s14, %s1766_s14   ;;  %s1456_s13 = sphi %s1531_s13, %s1765_s13  }
   0x4   : > { %s1556_s19 = sadd.s32 1, %s1468_s16   ;;  %s250_s20 = sadd.s32 1, %s1464_s15 }
   0x5   : > { %s247_s21 = ssub.s32 %s1468_s16, %s1556_s19  ;;  %p260_p0 = scmp.ne.s32.totalorder %s1464_s15, %s1460_s14 }
   0x6   : > { %p248_p1 = scmp.eq.s32.totalorder %s247_s21, 0  ;;  %p261_p2 = scmp.eq.s32.totalorder %s1552_s17, 1 }
   0x7   : > { %p266_p3 = scmp.ne.s32.totalorder %s1460_s14, %s1456_s13  ;;  %p267_p4 = scmp.eq.s32.totalorder %s1144_s18, 1 }
   0x8   : > { %s1567_s22 = scalar_select %p248_p1, %s1464_s15, %s250_s20  }
   0x9   : > { %p1569_p5 = por %p261_p2, %p260_p0  ;;  %p1573_p6 = por %p267_p4, %p266_p3 }
   0xa   : > { %p1147_p7 = scmp.ge.s32.totalorder %s1468_s16, 1  ;;  %p321_p8 = scmp.lt.s32.totalorder %s1468_s16, 3 }
   0xc   : > { %p322_p9 = pnand %p1147_p7, %p321_p8 }
   0xd   : > { %p360_p10 = scmp.lt.s32.totalorder (!%p322_p9), %s1552_s17, 1  ;;  %v367_v0 = vlaneseq (!%p322_p9)  ;;  %v387_v1 = vld [vmem:[%s1754_s2] sm:$0xff] (!%p322_p9)  ;;  %vm391_vm0 = vcmask (!%p322_p9), 130048   ;;  %v1470_v7 = vmov (!%p322_p9), 1.0|1.0   ;;  %v388_v8 = vld [vmem:[%s1754_s2 + $0x8] sm:$0xff] (!%p322_p9) }
   0xe   : > { %325 = sbr.rel (%p322_p9) target bundleno = 734 (0x2de), region = 60  ;;  %v489_v2 = vld [vmem:[%s1755_s3] sm:$0xff] (!%p322_p9)  ;;  %1225 = vmatprep.mubr.msk.f32.mxu0 (!%p322_p9), %vm391_vm0, %v387_v1  ;;  %v490_v9 = vld [vmem:[%s1755_s3 + $0x8] sm:$0xff] (!%p322_p9)  ;;  %v389_v10 = vld [vmem:[%s1754_s2 + $0x10] sm:$0xff] (!%p322_p9)  ;;  %vm602_vm7 = vcmask (!%p322_p9), 261120   ;;  %v1471_v15 = vmov (!%p322_p9), 0.0|0.0  }
   0xf   : > { %1235 = vmatprep.mubr.msk.f32.mxu1 (!%p322_p9), %vm391_vm0, %v489_v2  ;;  %v368_v3 = vshrl.u32 (!%p322_p9), %v367_v0, 7  ;;  %v491_v11 = vld [vmem:[%s1755_s3 + $0x10] sm:$0xff] (!%p322_p9)  ;;  %v390_v12 = vld [vmem:[%s1754_s2 + $0x18] sm:$0xff] (!%p322_p9)  ;;  %v598_v14 = vld [vmem:[%s1757_s5] sm:$0xff] (!%p322_p9)  ;;  %v1472_v18 = vmov (!%p322_p9), 0   ;;  %vm1473_vm8 = vmmov (!%p322_p9), 0  }
  0x10   : > { %v492_v13 = vld [vmem:[%s1755_s3 + $0x18] sm:$0xff] (!%p322_p9)  ;;  %v797_v16 = vld [vmem:[%s1758_s6] sm:$0xff] (!%p322_p9)  ;;  %v799_v17 = vld [vmem:[%s1758_s6 + $0x10] sm:$0xff] (!%p322_p9)  ;;  %1396 = vset.pattern.permute.xlu0 (!%p322_p9), %v1472_v18  ;;  %1397 = vset.pattern.permute.xlu1 (!%p322_p9), %v1472_v18  ;;  %v1474_v57 = vmov (!%p322_p9), 0.0   ;;  %s357_s20 = sand.u32 (!%p322_p9), 1, %s1460_s14   ;;  %s1175_s27 = sshll.u32 (!%p322_p9), %s1552_s17, 6 }
  0x11   : > { %v369_v4 = vadd.s32 (!%p322_p9), 8, %v368_v3  ;;  %803 = vperm.xlu0 (!%p322_p9), %1396, %v797_v16   ;;  %813 = vperm.xlu1 (!%p322_p9), %1397, %v799_v17   ;;  %v798_v19 = vld [vmem:[%s1758_s6 + $0x8] sm:$0xff] (!%p322_p9)  ;;  %v800_v20 = vld [vmem:[%s1758_s6 + $0x18] sm:$0xff] (!%p322_p9)  ;;  %v600_v50 = vld [vmem:[%s1757_s5 + $0x10] sm:$0xff] (!%p322_p9)  ;;  %s1712_s30 = scalar_lea.hbm (!%p322_p9), %s1762_s10, %s1175_s27  ;;  %s1066_s11 = scalar_lea.sflag (!%p322_p9), [#allocation3], %s357_s20 }
  0x12   : > { %v599_v49 = vld [vmem:[%s1757_s5 + $0x8] sm:$0xff] (!%p322_p9)  ;;  %v601_v51 = vld [vmem:[%s1757_s5 + $0x18] sm:$0xff] (!%p322_p9)  ;;  %v594_v52 = vld [vmem:[%s1756_s4] sm:$0xff] (!%p322_p9) }
  0x13   : > { %v595_v53 = vld [vmem:[%s1756_s4 + $0x8] sm:$0xff] (!%p322_p9)  ;;  %v596_v54 = vld [vmem:[%s1756_s4 + $0x10] sm:$0xff] (!%p322_p9)  ;;  %v597_v55 = vld [vmem:[%s1756_s4 + $0x18] sm:$0xff] (!%p322_p9) }
  0x14   : > { %v834_v56 = vld [vmem:[%s1760_s8] sm:$0xf] (!%p322_p9) }
  0x15   : > { %s361_s29 = scalar_select %p360_p10, %s1552_s17, 1  ;;  %808 = vperm.xlu0 %1396, %v798_v19   ;;  %818 = vperm.xlu1 %1397, %v800_v20   ;;  %v833_v17 = vld [vmem:[%s1759_s7] sm:$0xf] }
  0x16   : > { %v985_v18 = vld [vmem:[%s1761_s9] sm:$0xf]  ;;  %s1475_s17 = smov [#allocation2]  }
  0x17   : > { %s362_s12 = scalar_lea.vmem %s1752_s0, %s361_s29  ;;  %s365_s21 = scalar_lea.vmem %s1753_s1, %s361_s29 }
  0x18   : > { %v1149_v5 = vld [vmem:[%s362_s12] ss:$0 sm:$0xff]  ;;  %s1410_s18 = sshll.u32 %s1475_s17, 4  ;;  %s1411_s18 = int_to_ptr.vmem [resolvable:$false] %s1410_s18 }
  0x19   : > { %v1150_v6 = vld [vmem:[%s365_s21] ss:$0 sm:$0xff]  ;;  %vm374_vm1 = vcmp.eq.s32.totalorder %v1149_v5, %v368_v3  ;;  %vm375_vm2 = vcmp.eq.s32.totalorder %v1149_v5, %v369_v4  ;;  %s1148_s21 = sshll.u32 %s357_s20, 2 }
  0x1a   : > { %vm383_vm3 = vcmp.eq.s32.totalorder %v1150_v6, %v368_v3  ;;  %vm384_vm4 = vcmp.eq.s32.totalorder %v1150_v6, %v369_v4  ;;  %vm1302_vm5 = vmpackc.low %vm375_vm2, %vm374_vm1  ;;  %s359_s25 = scalar_lea.vmem [#allocation2], %s1148_s21  ;;  %s1412_s21 = scalar_lea.vmem %s1411_s18, 128 }
  0x1b   : > { %1303 = vmatprep.subr.msk.bf16.mxu0 %vm1302_vm5, %v1470_v7  ;;  %vm1306_vm6 = vmpackc.low %vm384_vm4, %vm383_vm3  ;;  %s1079_s26 = sshll.u32 %s359_s25, 4  ;;  %s1707_s26 = int_to_ptr.vmem [resolvable:$true] %s1079_s26 }
  0x1c   : > { %1307 = vmatprep.subr.msk.bf16.mxu1 %vm1306_vm6, %v1470_v7  ;;  %1305 = vmatpush3.bf16.msk.msra.mxu0 %vm1302_vm5, %v1470_v7  ;;  %s1406_s12 = scalar_lea.vmem %s1707_s26, 64  ;;  %p1413_p0 = scmp.lt.s32.totalorder %s1707_s26, %s1411_s18 }
  0x1d   : > { %1309 = vmatpush3.bf16.msk.msra.mxu1 %vm1306_vm6, %v1470_v7  ;;  %p1407_p11 = scmp.ne.s32.totalorder %s1707_s26, %s1406_s12  ;;  %p1414_p1 = scmp.lt.s32.totalorder %s1412_s21, %s1406_s12 }
  0x1e   : > { %1326 = vmatprep.subr.bf16.mxu1 %v1471_v15 }
  0x1f   : > { %1226 = vmatmul.mubr.msk.f32.vlgmr.msra.gmra.mrb[0].mxu0 %vm391_vm0, %v388_v8  ;;  %p1408_p12 = pnand %p1407_p11, %p1569_p5  ;;  %p1415_p2 = por %p1414_p1, %p1413_p0 }
  0x20   : > { %1236 = vmatmul.mubr.msk.f32.vlgmr.msra.gmra.mrb[0].mxu1 %vm391_vm0, %v490_v9  ;;  %1228 = vmatprep.mubr.msk.f32.mxu0 %vm391_vm0, %v389_v10 }
  0x21   : > { %1238 = vmatprep.mubr.msk.f32.mxu1 %vm391_vm0, %v491_v11  ;;  %p1409_p13 = pneg %p1408_p12 }
  0x23   : > { %1229 = vmatmul.mubr.msk.f32.gmra.mrb[2].mxu0 %vm391_vm0, %v390_v12  ;;  %p1416_p3 = pnand %p1415_p2, %p1409_p13 }
  0x24   : > { %1239 = vmatmul.mubr.msk.f32.gmra.mrb[2].mxu1 %vm391_vm0, %v492_v13  ;;  %1249 = vmatprep.mubr.msk.f32.mxu0 %vm602_vm7, %v598_v14 }
  0x25   : > { %1277 = vmatprep.mubr.msk.f32.mxu1 %vm1473_vm8, %v1474_v57 }
  0x90   : > { %v804_v58 = vpop.permute.xlu0 %803  ;;  %v814_v59 = vpop.permute.xlu1 %813 }
  0x94   : > { %v809_v60 = vpop.permute.xlu0 %808  ;;  %v819_v2 = vpop.permute.xlu1 %818 }
  0xf2   : > { %v1227_v21 = vpop.f32.mrb[0].mxu0 }
  0xf3   : > { %v836_v22 = vmul.f32 %v1227_v21, %v1227_v21  ;;  %v1237_v23 = vpop.f32.mrb[0].mxu1  ;;  %v470_v24 = vpop.f32.mrb[1].mxu0 }
  0xf4   : > { %v1636_v25 = vmul.f32 %v1237_v23, %v1227_v21  ;;  %v1638_v26 = vmul.f32 %v1237_v23, %v1237_v23  ;;  %v1318_v27 = vpack.c.bf16 %v1227_v21, %v470_v24  ;;  %v835_v28 = vmul.f32 %v470_v24, %v470_v24  ;;  %v571_v29 = vpop.f32.mrb[1].mxu1 }
  0xf5   : > { %v590_v30 = vmul.f32 %v571_v29, %v470_v24  ;;  %v1310_v31 = vpack.c.bf16 %v1237_v23, %v571_v29  ;;  %v1640_v32 = vmul.f32 %v571_v29, %v571_v29 }
  0xf6   : > { %v1327_v33 = vpack.c.bf16 %v836_v22, %v835_v28  ;;  %v1230_v34 = vpop.f32.mrb[2].mxu0 }
  0xf7   : > { %v1339_v35 = vpack.c.bf16 %v1638_v26, %v1640_v32  ;;  %v838_v36 = vmul.f32 %v1230_v34, %v1230_v34  ;;  %v1240_v37 = vpop.f32.mrb[2].mxu1  ;;  %1311 = vmatprep.subr.bf16.mxu0 %v1310_v31  ;;  %v480_v38 = vpop.f32.mrb[3].mxu0 }
  0xf8   : > { %v593_v39 = vmul.f32 %v1240_v37, %v1230_v34  ;;  %v1644_v40 = vmul.f32 %v1240_v37, %v1240_v37  ;;  %v1322_v41 = vpack.c.bf16 %v1230_v34, %v480_v38  ;;  %v837_v42 = vmul.f32 %v480_v38, %v480_v38  ;;  %v581_v43 = vpop.f32.mrb[3].mxu1  ;;  %1313 = vmatpush3.bf16.msra.mxu0 %v1310_v31 }
  0xf9   : > { %v592_v44 = vmul.f32 %v581_v43, %v480_v38  ;;  %v1314_v45 = vpack.c.bf16 %v1240_v37, %v581_v43  ;;  %v1646_v46 = vmul.f32 %v581_v43, %v581_v43  ;;  %1328 = vmatpush3.bf16.msra.mxu1 %v1327_v33 }
  0xfa   : > { %v1330_v47 = vpack.c.bf16 %v838_v36, %v837_v42  ;;  %1329 = vmatprep.subr.bf16.mxu1 %v1471_v15 }
  0xfb   : > { %v1342_v48 = vpack.c.bf16 %v1644_v40, %v1646_v46  ;;  %1315 = vmatprep.subr.bf16.mxu0 %v1314_v45 }
  0xfc   : > { %1317 = vmatpush3.bf16.msra.mxu0 %v1314_v45 }
  0xfd   : > { %1319 = vmatprep.subr.bf16.mxu0 %v1318_v27  ;;  %1331 = vmatpush3.bf16.msra.mxu1 %v1330_v47 }
  0xfe   : > { %1332 = vmatprep.subr.bf16.mxu1 %v1471_v15 }
  0xff   : > { %1250 = vmatmul.mubr.msk.f32.vlgmr.msra.gmra.mrb[4].mxu0 %vm602_vm7, %v599_v49 }
 0x100   : > { %1321 = vmatpush3.bf16.msra.mxu0 %v1318_v27  ;;  %1252 = vmatprep.mubr.msk.f32.mxu0 %vm602_vm7, %v600_v50 }
 0x101   : > { %1323 = vmatprep.subr.bf16.mxu0 %v1322_v41  ;;  %1278 = vmatmul.mubr.msk.f32.vlgmr.msra.gmra.mrb[4].mxu1 %vm602_vm7, %v834_v56 }
 0x102   : > { %1288 = vmatprep.mubr.msk.f32.mxu1 %vm1473_vm8, %v1474_v57 }
 0x103   : > { %1253 = vmatmul.mubr.msk.f32.gmra.mrb[6].mxu0 %vm602_vm7, %v601_v51 }
 0x104   : > { %1325 = vmatpush3.bf16.msra.mxu0 %v1322_v41  ;;  %1263 = vmatprep.mubr.msk.f32.mxu0 %vm602_vm7, %v594_v52 }
 0x107   : > { %1264 = vmatmul.mubr.msk.f32.vlgmr.msra.gmra.mrb[4].mxu0 %vm602_vm7, %v595_v53 }
 0x108   : > { %1266 = vmatprep.mubr.msk.f32.mxu0 %vm602_vm7, %v596_v54 }
 0x10b   : > { %1267 = vmatmul.mubr.msk.f32.gmra.mrb[6].mxu0 %vm602_vm7, %v597_v55 }
 0x1da   : > { %v1265_v61 = vpop.f32.mrb[4].mxu0 }
 0x1db   : > { %v822_v62 = vadd.f32 %v1265_v61, %v809_v60  ;;  %v778_v63 = vpop.f32.mrb[5].mxu0 }
 0x1dc   : > { %v821_v0 = vadd.f32 %v804_v58, %v778_v63 }
 0x1dd   : > { %v826_v1 = vadd.f32 %v822_v62, %v1636_v25 }
 0x1de   : > { %v825_v3 = vadd.f32 %v821_v0, %v590_v30  ;;  %v1268_v4 = vpop.f32.mrb[6].mxu0 }
 0x1df   : > { %1398 = vtanh.f32 %v826_v1  ;;  %v824_v5 = vadd.f32 %v1268_v4, %v819_v2  ;;  %v788_v6 = vpop.f32.mrb[7].mxu0 }
 0x1e0   : > { %1400 = vtanh.f32 %v825_v3  ;;  %v823_v7 = vadd.f32 %v814_v59, %v788_v6 }
 0x1e1   : > { %v828_v8 = vadd.f32 %v824_v5, %v593_v39 }
 0x1e2   : > { %v827_v9 = vadd.f32 %v823_v7, %v592_v44 }
 0x1e3   : > { %1402 = vtanh.f32 %v828_v8 }
 0x1e4   : > { %1404 = vtanh.f32 %v827_v9 }
 0x1e9   : > { %v1399_v10 = vpop.eup %1398 }
 0x1ea   : > { %v1401_v11 = vpop.eup %1400 }
 0x1eb   : > { %v1333_v12 = vpack.c.bf16 %v1399_v10, %v1401_v11 }
 0x1ed   : > { %v1403_v13 = vpop.eup %1402  ;;  %1334 = vmatpush3.bf16.msra.mxu1 %v1333_v12 }
 0x1ee   : > { %v1405_v14 = vpop.eup %1404  ;;  %1335 = vmatprep.subr.bf16.mxu1 %v1471_v15 }
 0x1ef   : > { %v1336_v16 = vpack.c.bf16 %v1403_v13, %v1405_v14 }
 0x1f1   : > { %1337 = vmatpush3.bf16.msra.mxu1 %v1336_v16 }
 0x1f2   : > { %1338 = vmatprep.subr.bf16.mxu1 %v1471_v15 }
 0x1f4   : > { %1289 = vmatmul.mubr.msk.f32.vlgmr.msra.gmra.mrb[4].mxu1 %vm602_vm7, %v833_v17 }
 0x1f5   : > { %1340 = vmatpush3.bf16.msra.mxu1 %v1339_v35  ;;  %1299 = vmatprep.mubr.msk.f32.mxu1 %vm1473_vm8, %v1474_v57 }
 0x1f6   : > { %1341 = vmatprep.subr.bf16.mxu1 %v1471_v15 }
 0x1f9   : > { %1343 = vmatpush3.bf16.msra.mxu1 %v1342_v48 }
 0x1fc   : > { %1300 = vmatmul.mubr.msk.f32.vlgmr.msra.gmra.mrb[4].mxu1 %vm602_vm7, %v985_v18 }
 0x2cf   : > { %v1059_v15 = vpop.f32.mrb[4].mxu1 }
 0x2d0   : > { %1064 = vst [vmem:[%s359_s25] sm:$0xf] %v1059_v15  ;;  %v1301_v19 = vpop.f32.mrb[5].mxu1 }
 0x2d1   : > { %1419 = shalt.err (!%p1416_p3)
}
 0x2d2   : > { %s1420_s20 = scalar_lea.hbm %s1712_s30, 64  ;;  %s1424_s28 = scalar_lea.hbm %s1762_s10, 128 }
 0x2d3   : > { %p1421_p4 = scmp.ne.s32.totalorder %s1712_s30, %s1420_s20  ;;  %p1425_p9 = scmp.lt.u32.totalorder %s1712_s30, %s1762_s10 }
 0x2d4   : > { %p1426_p10 = scmp.lt.u32.totalorder %s1424_s28, %s1420_s20  ;;  %p1428_p12 = scmp.lt.u32.totalorder %s1420_s20, %s1712_s30 }
 0x2d5   : > { %p1422_p7 = pnand %p1421_p4, %p1569_p5 }
 0x2d6   : > { %p1427_p11 = por %p1426_p10, %p1425_p9 }
 0x2d7   : > { %p1423_p8 = pneg %p1422_p7 }
 0x2d8   : > { %p1429_p13 = por %p1428_p12, %p1427_p11 }
 0x2da   : > { %p1430_p0 = pnand %p1429_p13, %p1423_p8 }
 0x2dc   : > { %1433 = shalt.err (!%p1430_p0)
}
 0x2dd   : > { %1352 = dma.vmem_to_hbm [thread:$0]  (%p1569_p5), %s1707_s26, 64, %s1712_s30, %s1066_s11  }
 0x2de PF: > { %p1358_p1 = scmp.ge.s32.totalorder %s1468_s16, 2  ;;  %s1091_s12 = sand.u32 1, %s1456_s13  }
 0x2df   : > { %s1092_s18 = scalar_lea.sflag [#allocation3], %s1091_s12 }
 0x2e0   : > { %p1355_p2 = pnand %p1358_p1, %p1573_p6 }
 0x2e2   : > { %1451 = dma.done.wait (!%p1355_p2), %s1092_s18, 64  }
 0x2e3   : > { %1453 = vsyncadd (!%p1355_p2), %s1092_s18, 4294967232  ;;  %p20_p3 = scmp.ge.s32.totalorder %s1556_s19, 4   ;;  %s1765_s13 = smov %s1460_s14 }
 0x2e4   : > { %s1766_s14 = smov %s1464_s15  ;;  %s1767_s15 = smov %s1567_s22 }
 0x2e5   : > { %s1768_s16 = smov %s1556_s19  ;;  %22 = sbr.rel (!%p20_p3) target bundleno = 3 (0x3), region = 98 }
 0x2ec   :  { %1097 = vsyncpa [#allocation3], 1 }
 0x2ed   :  { %1099 = vsyncpa [#allocation3 + $0x1], 1 }

</bundles_post_ra>
